<compile_context>
chip_gen: v5e
topology: v5e:2x2
jax: 0.10.0
libtpu: 0.0.40
codegen_flags: <defaults>
</compile_context>

<pallas_src>
import jax
import jax.numpy as jnp
from jax.experimental import pallas as pl
from jax.experimental.pallas import tpu as pltpu


def _round_up(x, m):
    return (x + m - 1) // m * m


def _cdiv(a, b):
    return -(-a // b)


def _vmem_info():
    """(physical_vmem_bytes, usable_cap_bytes) with headroom for compiler scratch."""
    try:
        phys = int(getattr(pltpu.get_tpu_info(), "vmem_capacity_bytes", 64 << 20))
    except Exception:
        phys = 64 << 20                      # conservative: v7x per-TC VMEM
    usable = int(phys * 0.85)                # headroom: internal scratch, sems, out buffers
    return phys, usable


# --------------------------------------------------------------------------- #
# Kernels
# --------------------------------------------------------------------------- #
def _fused_kernel(x_ref, w1_ref, b1_ref, w2_ref, b2_ref, o_ref):
    # x_ref: (TM, H) native dtype   w1: (H, H) bf16   b1: (1, H) f32
    # w2: (H, Lp) bf16              b2: (1, Lp) f32   o:  (TM, Lp)
    x = x_ref[...].astype(jnp.bfloat16)           # in-kernel cast (VPU, hides under MXU)
    h = jnp.dot(x, w1_ref[...], preferred_element_type=jnp.float32)
    h = jnp.tanh(h + b1_ref[...])
    y = jnp.dot(h.astype(jnp.bfloat16), w2_ref[...],
                preferred_element_type=jnp.float32)
    o_ref[...] = (y + b2_ref[...]).astype(o_ref.dtype)


def _ktiled_kernel(x_ref, w1_ref, b1_ref, w2_ref, b2_ref, o_ref, acc_ref):
    # grid = (M/TM, H/TK); acc_ref: (TM, H) f32 accumulator for x @ W1
    k = pl.program_id(1)

    @pl.when(k == 0)
    def _():
        acc_ref[...] = jnp.zeros_like(acc_ref)

    x = x_ref[...].astype(jnp.bfloat16)
    acc_ref[...] += jnp.dot(x, w1_ref[...], preferred_element_type=jnp.float32)

    @pl.when(k == pl.num_programs(1) - 1)
    def _():
        h = jnp.tanh(acc_ref[...] + b1_ref[...])
        y = jnp.dot(h.astype(jnp.bfloat16), w2_ref[...],
                    preferred_element_type=jnp.float32)
        o_ref[...] = (y + b2_ref[...]).astype(o_ref.dtype)


# --------------------------------------------------------------------------- #
# Wrapper
# --------------------------------------------------------------------------- #
def regression_head(features, w1, b1, w2, b2, *, tm_target=None, force_k_tiled=False):
    """features: [..., hidden] -> [..., num_labels].

    For repeated calls, pre-cast w1/w2 to bf16 once on the caller side to avoid
    the per-call cast pass (the wrapper only casts if needed).
    """
    orig_shape = features.shape
    hidden = orig_shape[-1]
    num_labels = w2.shape[1]
    out_dtype = features.dtype
    x_bytes = jnp.dtype(features.dtype).itemsize
    out_bytes = jnp.dtype(out_dtype).itemsize

    phys_vmem, usable_vmem = _vmem_info()
    if tm_target is None:
        # v5e/v6e (128 MiB VMEM): bigger M tiles amortize per-step overhead;
        # v7x (64 MiB): stay at 512 and keep headroom.
        tm_target = 1024 if (phys_vmem >= (100 << 20) and hidden <= 2048) else 512

    x2d = features.reshape(-1, hidden)
    m = x2d.shape[0]

    # ---- lane-dense output padding (slice back at the end) -----------------
    l_pad = _round_up(num_labels, 128)
    if l_pad != num_labels:
        w2 = jnp.pad(w2, ((0, 0), (0, l_pad - num_labels)))
        b2 = jnp.pad(jnp.reshape(b2, (1, -1)), ((0, 0), (0, l_pad - num_labels)))
    b1 = jnp.reshape(b1, (1, hidden)).astype(jnp.float32)
    b2 = jnp.reshape(b2, (1, l_pad)).astype(jnp.float32)

    if w1.dtype != jnp.bfloat16:
        w1 = w1.astype(jnp.bfloat16)
    if w2.dtype != jnp.bfloat16:
        w2 = w2.astype(jnp.bfloat16)

    granule = 16                                   # bf16 sublane-packing granule

    # ---- dispatch: weights-resident fused kernel vs K-tiled fallback -------
    tk = None
    if hidden > 512 and hidden % 512 == 0:
        tk = 512
    elif hidden > 256 and hidden % 256 == 0:
        tk = 256
    elif hidden > 128 and hidden % 128 == 0:
        tk = 128
    w1_bytes = hidden * hidden * 2
    use_ktiled = (force_k_tiled or w1_bytes > int(0.35 * usable_vmem)) and tk is not None

    def _budget(tm_, wbuf):
        """Honest VMEM estimate: weights x wbuf, x/out double buffers, implicit
        f32/bf16 intermediates (h, casts), + f32 accumulator for the K-tiled path."""
        if use_ktiled:
            w = 2 * tk * hidden * 2 + wbuf * (hidden * l_pad * 2 + hidden * 4 + l_pad * 4)
            stream = 2 * tm_ * tk * x_bytes + 2 * tm_ * l_pad * out_bytes
            extra = tm_ * hidden * 4                              # f32 accumulator scratch
            interm = tm_ * tk * 2 + tm_ * hidden * (4 + 2) + tm_ * l_pad * 4
        else:
            w = wbuf * (hidden * hidden * 2 + hidden * l_pad * 2 + hidden * 4 + l_pad * 4)
            stream = 2 * tm_ * hidden * x_bytes + 2 * tm_ * l_pad * out_bytes
            extra = 0
            interm = tm_ * hidden * (2 + 4 + 2) + tm_ * l_pad * 4
        return w + stream + extra + interm

    # ---- pick tm: fit VMEM, granule 16, prefer an even number of M steps ---
    tm = max(granule, min(_round_up(tm_target, granule), _round_up(m, granule)))
    while tm > granule and _budget(tm, 1) > usable_vmem:
        tm = max(granule, _round_up(tm // 2, granule))

    steps = _cdiv(m, tm)
    if steps > 1 and steps % 2 == 1:
        # even step count keeps both v7x TensorCores busy on the "parallel" axis
        tm_even = _round_up(_cdiv(m, steps + 1), granule)
        if tm_even >= granule and _cdiv(m, tm_even) % 2 == 0:
            tm = tm_even

    cost = pl.CostEstimate(
        flops=2 * m * hidden * (hidden + l_pad),
        transcendentals=m * hidden,
        bytes_accessed=(m * hidden * x_bytes + hidden * hidden * 2
                        + hidden * l_pad * 2 + hidden * 4 + l_pad * 4
                        + m * l_pad * out_bytes),
    )

    def _call(single_buffer_residents):
        wbuf = 1 if single_buffer_residents else 2
        vmem_limit = min(int(_budget(tm, wbuf) * 1.2) + (2 << 20), usable_vmem)
        vmem_limit = max(vmem_limit, 16 << 20)

        if single_buffer_residents:
            def rspec(shape, imap):
                return pl.BlockSpec(shape, imap, pipeline_mode=pl.Buffered(1))
        else:
            def rspec(shape, imap):
                return pl.BlockSpec(shape, imap)

        if not use_ktiled:
            return pl.pallas_call(
                _fused_kernel,
                out_shape=jax.ShapeDtypeStruct((m, l_pad), out_dtype),
                grid_spec=pl.GridSpec(
                    grid=(_cdiv(m, tm),),
                    in_specs=[
                        pl.BlockSpec((tm, hidden), lambda i: (i, 0)),       # x (streamed)
                        rspec((hidden, hidden), lambda i: (0, 0)),          # W1 (resident)
                        rspec((1, hidden), lambda i: (0, 0)),               # b1
                        rspec((hidden, l_pad), lambda i: (0, 0)),           # W2
                        rspec((1, l_pad), lambda i: (0, 0)),                # b2
                    ],
                    out_specs=pl.BlockSpec((tm, l_pad), lambda i: (i, 0)),
                ),
                compiler_params=pltpu.CompilerParams(
                    dimension_semantics=("parallel",),
                    vmem_limit_bytes=vmem_limit,
                ),
                cost_estimate=cost,
            )(x2d, w1, b1, w2, b2)

        return pl.pallas_call(
            _ktiled_kernel,
            out_shape=jax.ShapeDtypeStruct((m, l_pad), out_dtype),
            grid_spec=pltpu.PrefetchScalarGridSpec(
                num_scalar_prefetch=0,
                grid=(_cdiv(m, tm), hidden // tk),
                in_specs=[
                    pl.BlockSpec((tm, tk), lambda i, k: (i, k)),            # x
                    pl.BlockSpec((tk, hidden), lambda i, k: (k, 0)),        # W1 (streamed over K)
                    rspec((1, hidden), lambda i, k: (0, 0)),                # b1
                    rspec((hidden, l_pad), lambda i, k: (0, 0)),            # W2
                    rspec((1, l_pad), lambda i, k: (0, 0)),                 # b2
                ],
                out_specs=pl.BlockSpec((tm, l_pad), lambda i, k: (i, 0)),
                scratch_shapes=[pltpu.VMEM((tm, hidden), jnp.float32)],
            ),
            compiler_params=pltpu.CompilerParams(
                dimension_semantics=("parallel", "arbitrary"),
                vmem_limit_bytes=vmem_limit,
            ),
            cost_estimate=cost,
        )(x2d, w1, b1, w2, b2)

    try:
        out = _call(True)
    except Exception:
        # Safety net for jax builds that reject Buffered(1) on constant-index
        # inputs: identical math, just default (double) weight buffering.
        out = _call(False)

    out = out[:, :num_labels]
    return out.reshape(*orig_shape[:-1], num_labels)


def init_params(key, hidden_size, num_labels, dtype=jnp.float32):
    """Deterministic nn.Linear-style init: U(-1/sqrt(fan_in), 1/sqrt(fan_in))."""
    k1, k2, k3, k4 = jax.random.split(key, 4)
    bound1 = 1.0 / jnp.sqrt(hidden_size)
    w1 = jax.random.uniform(k1, (hidden_size, hidden_size), dtype,
                            minval=-bound1, maxval=bound1)
    b1 = jax.random.uniform(k2, (1, hidden_size), dtype,
                            minval=-bound1, maxval=bound1)
    w2 = jax.random.uniform(k3, (hidden_size, num_labels), dtype,
                            minval=-bound1, maxval=bound1)
    b2 = jax.random.uniform(k4, (1, num_labels), dtype,
                            minval=-bound1, maxval=bound1)
    return w1, b1, w2, b2


if __name__ == "__main__":
    key = jax.random.PRNGKey(0)
    k_feat, k_params, k_feat2, k_params2 = jax.random.split(key, 4)

    # ---- Test 1: weights-resident fused path --------------------------------
    batch, seq, hidden, num_labels = 2, 8, 32, 4
    features = jax.random.normal(k_feat, (batch, seq, hidden), jnp.float32)
    w1, b1, w2, b2 = init_params(k_params, hidden, num_labels)

    out = regression_head(features, w1, b1, w2, b2)
    out = jax.block_until_ready(out)
    assert out.shape == (batch, seq, num_labels)

    # reference mirroring the kernel's bf16-operand / f32-accumulate path
    xb = features.reshape(-1, hidden).astype(jnp.bfloat16)
    h_ref = jnp.dot(xb, w1.astype(jnp.bfloat16), preferred_element_type=jnp.float32) + b1
    h_ref = jnp.tanh(h_ref)
    ref = jnp.dot(h_ref.astype(jnp.bfloat16), w2.astype(jnp.bfloat16),
                  preferred_element_type=jnp.float32) + b2
    ref = ref.reshape(batch, seq, num_labels)
    assert jnp.allclose(out, ref, atol=1e-3, rtol=1e-3)

    # loose sanity check against pure-f32 math (bf16 drift only)
    ref_f32 = jnp.tanh(features.reshape(-1, hidden) @ w1 + b1) @ w2 + b2
    ref_f32 = ref_f32.reshape(batch, seq, num_labels)
    assert jnp.allclose(out, ref_f32, atol=5e-2, rtol=5e-2)

    # ---- Test 2: K-tiled fallback path (large-H / v7x path), forced ---------
    hidden2, num_labels2 = 256, 3
    features2 = jax.random.normal(k_feat2, (batch, seq, hidden2), jnp.float32)
    w1b, b1b, w2b, b2b = init_params(k_params2, hidden2, num_labels2)

    out2 = regression_head(features2, w1b, b1b, w2b, b2b, force_k_tiled=True)
    out2 = jax.block_until_ready(out2)
    assert out2.shape == (batch, seq, num_labels2)

    xb2 = features2.reshape(-1, hidden2).astype(jnp.bfloat16)
    h2 = jnp.dot(xb2, w1b.astype(jnp.bfloat16), preferred_element_type=jnp.float32) + b1b
    h2 = jnp.tanh(h2)
    ref2 = jnp.dot(h2.astype(jnp.bfloat16), w2b.astype(jnp.bfloat16),
                   preferred_element_type=jnp.float32) + b2b
    ref2 = ref2.reshape(batch, seq, num_labels2)
    assert jnp.allclose(out2, ref2, atol=5e-3, rtol=5e-3)

    print("KERNEL_OK")
</pallas_src>

<mosaic_0001>
module attributes {stable_mosaic.version = 11 : i64} {
  func.func @_fused_kernel(%arg0: i32, %arg1: memref<16x32xf32, #tpu.memory_space<vmem>>, %arg2: memref<32x32xbf16, #tpu.memory_space<vmem>>, %arg3: memref<1x32xf32, #tpu.memory_space<vmem>>, %arg4: memref<32x128xbf16, #tpu.memory_space<vmem>>, %arg5: memref<1x128xf32, #tpu.memory_space<vmem>>, %arg6: memref<16x128xf32, #tpu.memory_space<vmem>>) attributes {dimension_semantics = [#tpu.dimension_semantics<parallel>], iteration_bounds = array<i64: 1>, scalar_prefetch = 0 : i64, scratch_operands = 0 : i64, tpu.core_type = #tpu.core_type<tc>, window_params = [{transform_indices = @transform_0, window_bounds = array<i64: 16, 32>}, {pipeline_mode = #tpu.pipeline_mode<synchronous>, transform_indices = @transform_1, window_bounds = array<i64: 32, 32>}, {pipeline_mode = #tpu.pipeline_mode<synchronous>, transform_indices = @transform_2, window_bounds = array<i64: 1, 32>}, {pipeline_mode = #tpu.pipeline_mode<synchronous>, transform_indices = @transform_3, window_bounds = array<i64: 32, 128>}, {pipeline_mode = #tpu.pipeline_mode<synchronous>, transform_indices = @transform_4, window_bounds = array<i64: 1, 128>}, {transform_indices = @transform_5, window_bounds = array<i64: 16, 128>}]} {
    %c0 = arith.constant 0 : index
    %c0_0 = arith.constant 0 : index
    %0 = vector.load %arg1[%c0, %c0_0] : memref<16x32xf32, #tpu.memory_space<vmem>>, vector<16x32xf32>
    %1 = arith.truncf %0 : vector<16x32xf32> to vector<16x32xbf16>
    %c0_1 = arith.constant 0 : index
    %c0_2 = arith.constant 0 : index
    %2 = vector.load %arg2[%c0_1, %c0_2] : memref<32x32xbf16, #tpu.memory_space<vmem>>, vector<32x32xbf16>
    %cst = arith.constant dense<0.000000e+00> : vector<16x32xf32>
    %3 = tpu.matmul %1, %2, %cst {dimension_numbers = #tpu.dot_dimension_numbers<[1], [0], [0], [1], [0, 0, 1, 1], [], []>} : vector<16x32xbf16>, vector<32x32xbf16>, vector<16x32xf32> -> vector<16x32xf32>
    %c0_3 = arith.constant 0 : index
    %c0_4 = arith.constant 0 : index
    %4 = vector.load %arg3[%c0_3, %c0_4] : memref<1x32xf32, #tpu.memory_space<vmem>>, vector<1x32xf32>
    %5 = vector.broadcast %4 : vector<1x32xf32> to vector<16x32xf32>
    %6 = arith.addf %3, %5 : vector<16x32xf32>
    %7 = math.tanh %6 : vector<16x32xf32>
    %8 = arith.truncf %7 : vector<16x32xf32> to vector<16x32xbf16>
    %c0_5 = arith.constant 0 : index
    %c0_6 = arith.constant 0 : index
    %9 = vector.load %arg4[%c0_5, %c0_6] : memref<32x128xbf16, #tpu.memory_space<vmem>>, vector<32x128xbf16>
    %cst_7 = arith.constant dense<0.000000e+00> : vector<16x128xf32>
    %10 = tpu.matmul %8, %9, %cst_7 {dimension_numbers = #tpu.dot_dimension_numbers<[1], [0], [0], [1], [0, 0, 1, 1], [], []>} : vector<16x32xbf16>, vector<32x128xbf16>, vector<16x128xf32> -> vector<16x128xf32>
    %c0_8 = arith.constant 0 : index
    %c0_9 = arith.constant 0 : index
    %11 = vector.load %arg5[%c0_8, %c0_9] : memref<1x128xf32, #tpu.memory_space<vmem>>, vector<1x128xf32>
    %12 = vector.broadcast %11 : vector<1x128xf32> to vector<16x128xf32>
    %13 = arith.addf %10, %12 : vector<16x128xf32>
    %c0_10 = arith.constant 0 : index
    %c0_11 = arith.constant 0 : index
    %14 = vector.load %arg6[%c0_10, %c0_11] : memref<16x128xf32, #tpu.memory_space<vmem>>, vector<16x128xf32>
    tpu.vector_store %arg6[%c0_10, %c0_11], %13 {strides = array<i32>} : memref<16x128xf32, #tpu.memory_space<vmem>>, vector<16x128xf32>,
    return
  }
  func.func @transform_0(%arg0: i32) -> (i32, i32) {
    %c0_i32 = arith.constant 0 : i32
    %c0_i32_0 = arith.constant 0 : i32
    return %arg0, %c0_i32 : i32, i32
  }
  func.func @transform_1(%arg0: i32) -> (i32, i32) {
    %c0_i32 = arith.constant 0 : i32
    %c0_i32_0 = arith.constant 0 : i32
    %c0_i32_1 = arith.constant 0 : i32
    return %c0_i32, %c0_i32_0 : i32, i32
  }
  func.func @transform_2(%arg0: i32) -> (i32, i32) {
    %c0_i32 = arith.constant 0 : i32
    %c0_i32_0 = arith.constant 0 : i32
    %c0_i32_1 = arith.constant 0 : i32
    return %c0_i32, %c0_i32_0 : i32, i32
  }
  func.func @transform_3(%arg0: i32) -> (i32, i32) {
    %c0_i32 = arith.constant 0 : i32
    %c0_i32_0 = arith.constant 0 : i32
    %c0_i32_1 = arith.constant 0 : i32
    return %c0_i32, %c0_i32_0 : i32, i32
  }
  func.func @transform_4(%arg0: i32) -> (i32, i32) {
    %c0_i32 = arith.constant 0 : i32
    %c0_i32_0 = arith.constant 0 : i32
    %c0_i32_1 = arith.constant 0 : i32
    return %c0_i32, %c0_i32_0 : i32, i32
  }
  func.func @transform_5(%arg0: i32) -> (i32, i32) {
    %c0_i32 = arith.constant 0 : i32
    %c0_i32_0 = arith.constant 0 : i32
    return %arg0, %c0_i32 : i32, i32
  }
}

module attributes {stable_mosaic.version = 11 : i64} {
  func.func @_fused_kernel(%arg0: i32, %arg1: memref<16x32xf32, #tpu.memory_space<vmem>>, %arg2: memref<32x32xbf16, #tpu.memory_space<vmem>>, %arg3: memref<1x32xf32, #tpu.memory_space<vmem>>, %arg4: memref<32x128xbf16, #tpu.memory_space<vmem>>, %arg5: memref<1x128xf32, #tpu.memory_space<vmem>>, %arg6: memref<16x128xf32, #tpu.memory_space<vmem>>) attributes {dimension_semantics = [#tpu.dimension_semantics<parallel>], iteration_bounds = array<i64: 1>, scalar_prefetch = 0 : i64, scratch_operands = 0 : i64, tpu.core_type = #tpu.core_type<tc>, window_params = [{transform_indices = @transform_0, window_bounds = array<i64: 16, 32>}, {pipeline_mode = #tpu.pipeline_mode<synchronous>, transform_indices = @transform_1, window_bounds = array<i64: 32, 32>}, {pipeline_mode = #tpu.pipeline_mode<synchronous>, transform_indices = @transform_2, window_bounds = array<i64: 1, 32>}, {pipeline_mode = #tpu.pipeline_mode<synchronous>, transform_indices = @transform_3, window_bounds = array<i64: 32, 128>}, {pipeline_mode = #tpu.pipeline_mode<synchronous>, transform_indices = @transform_4, window_bounds = array<i64: 1, 128>}, {transform_indices = @transform_5, window_bounds = array<i64: 16, 128>}]} {
    %c0 = arith.constant 0 : index
    %c0_0 = arith.constant 0 : index
    %0 = vector.load %arg1[%c0, %c0_0] : memref<16x32xf32, #tpu.memory_space<vmem>>, vector<16x32xf32>
    %1 = arith.truncf %0 : vector<16x32xf32> to vector<16x32xbf16>
    %c0_1 = arith.constant 0 : index
    %c0_2 = arith.constant 0 : index
    %2 = vector.load %arg2[%c0_1, %c0_2] : memref<32x32xbf16, #tpu.memory_space<vmem>>, vector<32x32xbf16>
    %cst = arith.constant dense<0.000000e+00> : vector<16x32xf32>
    %3 = tpu.matmul %1, %2, %cst {dimension_numbers = #tpu.dot_dimension_numbers<[1], [0], [0], [1], [0, 0, 1, 1], [], []>} : vector<16x32xbf16>, vector<32x32xbf16>, vector<16x32xf32> -> vector<16x32xf32>
    %c0_3 = arith.constant 0 : index
    %c0_4 = arith.constant 0 : index
    %4 = vector.load %arg3[%c0_3, %c0_4] : memref<1x32xf32, #tpu.memory_space<vmem>>, vector<1x32xf32>
    %5 = vector.broadcast %4 : vector<1x32xf32> to vector<16x32xf32>
    %6 = arith.addf %3, %5 : vector<16x32xf32>
    %7 = math.tanh %6 : vector<16x32xf32>
    %8 = arith.truncf %7 : vector<16x32xf32> to vector<16x32xbf16>
    %c0_5 = arith.constant 0 : index
    %c0_6 = arith.constant 0 : index
    %9 = vector.load %arg4[%c0_5, %c0_6] : memref<32x128xbf16, #tpu.memory_space<vmem>>, vector<32x128xbf16>
    %cst_7 = arith.constant dense<0.000000e+00> : vector<16x128xf32>
    %10 = tpu.matmul %8, %9, %cst_7 {dimension_numbers = #tpu.dot_dimension_numbers<[1], [0], [0], [1], [0, 0, 1, 1], [], []>} : vector<16x32xbf16>, vector<32x128xbf16>, vector<16x128xf32> -> vector<16x128xf32>
    %c0_8 = arith.constant 0 : index
    %c0_9 = arith.constant 0 : index
    %11 = vector.load %arg5[%c0_8, %c0_9] : memref<1x128xf32, #tpu.memory_space<vmem>>, vector<1x128xf32>
    %12 = vector.broadcast %11 : vector<1x128xf32> to vector<16x128xf32>
    %13 = arith.addf %10, %12 : vector<16x128xf32>
    %c0_10 = arith.constant 0 : index
    %c0_11 = arith.constant 0 : index
    %14 = vector.load %arg6[%c0_10, %c0_11] : memref<16x128xf32, #tpu.memory_space<vmem>>, vector<16x128xf32>
    tpu.vector_store %arg6[%c0_10, %c0_11], %13 {strides = array<i32>} : memref<16x128xf32, #tpu.memory_space<vmem>>, vector<16x128xf32>,
    return
  }
  func.func @transform_0(%arg0: i32) -> (i32, i32) {
    %c0_i32 = arith.constant 0 : i32
    %c0_i32_0 = arith.constant 0 : i32
    return %arg0, %c0_i32 : i32, i32
  }
  func.func @transform_1(%arg0: i32) -> (i32, i32) {
    %c0_i32 = arith.constant 0 : i32
    %c0_i32_0 = arith.constant 0 : i32
    %c0_i32_1 = arith.constant 0 : i32
    return %c0_i32, %c0_i32_0 : i32, i32
  }
  func.func @transform_2(%arg0: i32) -> (i32, i32) {
    %c0_i32 = arith.constant 0 : i32
    %c0_i32_0 = arith.constant 0 : i32
    %c0_i32_1 = arith.constant 0 : i32
    return %c0_i32, %c0_i32_0 : i32, i32
  }
  func.func @transform_3(%arg0: i32) -> (i32, i32) {
    %c0_i32 = arith.constant 0 : i32
    %c0_i32_0 = arith.constant 0 : i32
    %c0_i32_1 = arith.constant 0 : i32
    return %c0_i32, %c0_i32_0 : i32, i32
  }
  func.func @transform_4(%arg0: i32) -> (i32, i32) {
    %c0_i32 = arith.constant 0 : i32
    %c0_i32_0 = arith.constant 0 : i32
    %c0_i32_1 = arith.constant 0 : i32
    return %c0_i32, %c0_i32_0 : i32, i32
  }
  func.func @transform_5(%arg0: i32) -> (i32, i32) {
    %c0_i32 = arith.constant 0 : i32
    %c0_i32_0 = arith.constant 0 : i32
    return %arg0, %c0_i32 : i32, i32
  }
}

</mosaic_0001>

<bundles_post_ra>
// kernel: tpu_custom_call.1
= control target key start
LH: loop header
LB: loop body
LE: loop exit
PB: predicated region body
PF: predicated region fallthrough
CT: control target
= control target key end

     0   :  { %10 = vsyncpa [#allocation3], 0  ;;  %s374_s0 = inlined_call_operand.hbm [shape: f32[16,32], index: 0, kind: input, shape index: {}]   ;;  %s375_s1 = inlined_call_operand.hbm [shape: bf16[32,32], index: 1, kind: input, shape index: {}]   ;;  %s376_s2 = inlined_call_operand.vmem [shape: f32[1,32], index: 2, kind: input, shape index: {}]   ;;  %s377_s3 = inlined_call_operand.hbm [shape: bf16[32,128], index: 3, kind: input, shape index: {}]   ;;  %s378_s4 = inlined_call_operand.vmem [shape: f32[1,128], index: 4, kind: input, shape index: {}]   ;;  %s379_s5 = inlined_call_operand.hbm [shape: f32[16,128], index: 5, kind: output, shape index: {}]  }
   0x1   :  { %11 = vsyncpa [#allocation6], 0  ;;  %s30_s20 = sshll.u32 %s375_s1, 4  ;;  %s31_s20 = int_to_ptr.hbm [resolvable:$true] %s30_s20 }
   0x2   :  { %12 = vsyncpa [#allocation4], 0  ;;  %s310_s21 = smov [#allocation5]   ;;  %s17_s25 = sshll.u32 %s374_s0, 4  ;;  %s18_s25 = int_to_ptr.hbm [resolvable:$true] %s17_s25 }
   0x3   :  { %s32_s22 = sshll.u32 %s310_s21, 4  ;;  %s311_s26 = smov 64   ;;  %s33_s22 = int_to_ptr.vmem [resolvable:$true] %s32_s22 }
   0x4   :  { %s312_s27 = smov 4   ;;  %s313_s28 = smov [#allocation2]  }
   0x5   :  { %38 = dma.hbm_to_vmem [thread:$0]  %s31_s20, 256, %s33_s22, [#allocation6], %s311_s26, %s311_s26, %s312_s27  }
   0x6   :  { %s19_s29 = sshll.u32 %s313_s28, 4  ;;  %s314_s30 = smov 128   ;;  %s20_s29 = int_to_ptr.vmem [resolvable:$true] %s19_s29 }
   0x7   :  { %s315_s6 = smov 8   ;;  %s45_s8 = sshll.u32 %s377_s3, 4  ;;  %s46_s8 = int_to_ptr.hbm [resolvable:$true] %s45_s8 }
   0x8   :  { %25 = dma.hbm_to_vmem [thread:$0]  %s18_s25, 256, %s20_s29, [#allocation3], %s314_s30, %s314_s30, %s315_s6  }
   0x9   :  { %s316_s9 = smov [#allocation7]  }
   0xa   :  { %s47_s0 = sshll.u32 %s316_s9, 4  ;;  %s48_s0 = int_to_ptr.vmem [resolvable:$true] %s47_s0 }
   0xb   :  { %53 = dma.hbm_to_vmem [thread:$0]  %s46_s8, 256, %s48_s0, [#allocation6], %s311_s26, %s311_s26, %s312_s27  }
   0xc   :  { %304 = dma.done.wait [#allocation3], 256  }
   0xd   :  { %305 = vsyncadd [#allocation3], 4294967040 }
   0xe   :  { %306 = dma.done.wait [#allocation6], 512  }
   0xf   :  { %307 = vsyncadd [#allocation6], 4294966784  ;;  %v191_v0 = vld [vmem:[#allocation5 + $0x8] sm:$0xff]  ;;  %v190_v1 = vld [vmem:[#allocation5] sm:$0xff]  ;;  %vm92_vm0 = vcmask 261120   ;;  %s317_s13 = smov [#allocation8]  }
  0x10   :  { %102 = vmatpush.bf16.msra.mxu0 %v191_v0  ;;  %v69_v2 = vld [vmem:[#allocation2] sm:$0xff]  ;;  %v70_v3 = vld [vmem:[#allocation2 + $0x8] sm:$0xff]  ;;  %s156_s14 = sshll.u32 %s317_s13, 4  ;;  %s158_s16 = sshll.u32 %s379_s5, 4  ;;  %s157_s14 = int_to_ptr.vmem [resolvable:$true] %s156_s14  ;;  %s159_s16 = int_to_ptr.hbm [resolvable:$true] %s158_s16 }
  0x11   :  { %v71_v4 = vpack.c.bf16 %v70_v3, %v69_v2  ;;  %v193_v5 = vld [vmem:[#allocation7 + $0x8] sm:$0xff]  ;;  %v192_v6 = vld [vmem:[#allocation7] sm:$0xff] }
  0x12   :  { %142 = vmatpush.bf16.msra.mxu1 %v193_v5  ;;  %v202_v8 = vld [vmem:[%s376_s2] ss:$0 sm:$0xff] }
  0x13   :  { %v203_v15 = vld [vmem:[%s378_s4] ss:$0 sm:$0xff] }
  0x14   :  { %103 = vmatpush.bf16.msra.mxu0 %v190_v1 }
  0x16   :  { %143 = vmatpush.bf16.msra.mxu1 %v192_v6 }
  0x17   :  { %180 = vmatmul.msk.bf16.vlgmr.msra.gmra.mxu0 %vm92_vm0, %v71_v4 }
  0x94   :  { %v105_v7 = vpop.f32.mrf.mxu0 }
  0x95   :  { %v106_v9 = vadd.f32 %v202_v8, %v105_v7 }
  0x97   :  { %204 = vtanh.f32 %v106_v9 }
  0x9c   :  { %v107_v10 = vpop.f32.mrf.mxu0 }
  0x9d   :  { %v108_v11 = vadd.f32 %v202_v8, %v107_v10  ;;  %v205_v12 = vpop.eup %204 }
  0x9f   :  { %206 = vtanh.f32 %v108_v11 }
  0xa5   :  { %v207_v13 = vpop.eup %206 }
  0xa6   :  { %v112_v14 = vpack.c.bf16 %v207_v13, %v205_v12 }
  0xa8   :  { %189 = vmatmul.msk.bf16.vlgmr.msra.gmra.mxu1 %vm92_vm0, %v112_v14 }
 0x125   :  { %v145_v16 = vpop.f32.mrf.mxu1 }
 0x126   :  { %v146_v17 = vadd.f32 %v203_v15, %v145_v16 }
 0x128   :  { %150 = vst [vmem:[#allocation8] sm:$0xff] %v146_v17 }
 0x12d   :  { %v147_v18 = vpop.f32.mrf.mxu1 }
 0x12e   :  { %v148_v19 = vadd.f32 %v203_v15, %v147_v18 }
 0x130   :  { %151 = vst [vmem:[#allocation8 + $0x8] sm:$0xff] %v148_v19 }
 0x131   :  { %164 = dma.vmem_to_hbm [thread:$0]  %s157_s14, 256, %s159_s16, [#allocation4], %s314_s30, %s314_s30, %s315_s6  }
 0x132   :  { %308 = dma.done.wait [#allocation4], 256  }
 0x133   :  { %309 = vsyncadd [#allocation4], 4294967040 }
 0x134   :  { %169 = vsyncpa [#allocation3], 1 }
 0x135   :  { %170 = vsyncpa [#allocation6], 1 }
 0x136   :  { %171 = vsyncpa [#allocation4], 1 }

// kernel: tpu_custom_call.1
= control target key start
LH: loop header
LB: loop body
LE: loop exit
PB: predicated region body
PF: predicated region fallthrough
CT: control target
= control target key end

     0   :  { %10 = vsyncpa [#allocation3], 0  ;;  %s374_s0 = inlined_call_operand.hbm [shape: f32[16,32], index: 0, kind: input, shape index: {}]   ;;  %s375_s1 = inlined_call_operand.hbm [shape: bf16[32,32], index: 1, kind: input, shape index: {}]   ;;  %s376_s2 = inlined_call_operand.vmem [shape: f32[1,32], index: 2, kind: input, shape index: {}]   ;;  %s377_s3 = inlined_call_operand.hbm [shape: bf16[32,128], index: 3, kind: input, shape index: {}]   ;;  %s378_s4 = inlined_call_operand.vmem [shape: f32[1,128], index: 4, kind: input, shape index: {}]   ;;  %s379_s5 = inlined_call_operand.hbm [shape: f32[16,128], index: 5, kind: output, shape index: {}]  }
   0x1   :  { %11 = vsyncpa [#allocation6], 0  ;;  %s30_s20 = sshll.u32 %s375_s1, 4  ;;  %s31_s20 = int_to_ptr.hbm [resolvable:$true] %s30_s20 }
   0x2   :  { %12 = vsyncpa [#allocation4], 0  ;;  %s310_s21 = smov [#allocation5]   ;;  %s17_s25 = sshll.u32 %s374_s0, 4  ;;  %s18_s25 = int_to_ptr.hbm [resolvable:$true] %s17_s25 }
   0x3   :  { %s32_s22 = sshll.u32 %s310_s21, 4  ;;  %s311_s26 = smov 64   ;;  %s33_s22 = int_to_ptr.vmem [resolvable:$true] %s32_s22 }
   0x4   :  { %s312_s27 = smov 4   ;;  %s313_s28 = smov [#allocation2]  }
   0x5   :  { %38 = dma.hbm_to_vmem [thread:$0]  %s31_s20, 256, %s33_s22, [#allocation6], %s311_s26, %s311_s26, %s312_s27  }
   0x6   :  { %s19_s29 = sshll.u32 %s313_s28, 4  ;;  %s314_s30 = smov 128   ;;  %s20_s29 = int_to_ptr.vmem [resolvable:$true] %s19_s29 }
   0x7   :  { %s315_s6 = smov 8   ;;  %s45_s8 = sshll.u32 %s377_s3, 4  ;;  %s46_s8 = int_to_ptr.hbm [resolvable:$true] %s45_s8 }
   0x8   :  { %25 = dma.hbm_to_vmem [thread:$0]  %s18_s25, 256, %s20_s29, [#allocation3], %s314_s30, %s314_s30, %s315_s6  }
   0x9   :  { %s316_s9 = smov [#allocation7]  }
   0xa   :  { %s47_s0 = sshll.u32 %s316_s9, 4  ;;  %s48_s0 = int_to_ptr.vmem [resolvable:$true] %s47_s0 }
   0xb   :  { %53 = dma.hbm_to_vmem [thread:$0]  %s46_s8, 256, %s48_s0, [#allocation6], %s311_s26, %s311_s26, %s312_s27  }
   0xc   :  { %304 = dma.done.wait [#allocation3], 256  }
   0xd   :  { %305 = vsyncadd [#allocation3], 4294967040 }
   0xe   :  { %306 = dma.done.wait [#allocation6], 512  }
   0xf   :  { %307 = vsyncadd [#allocation6], 4294966784  ;;  %v191_v0 = vld [vmem:[#allocation5 + $0x8] sm:$0xff]  ;;  %v190_v1 = vld [vmem:[#allocation5] sm:$0xff]  ;;  %vm92_vm0 = vcmask 261120   ;;  %s317_s13 = smov [#allocation8]  }
  0x10   :  { %102 = vmatpush.bf16.msra.mxu0 %v191_v0  ;;  %v69_v2 = vld [vmem:[#allocation2] sm:$0xff]  ;;  %v70_v3 = vld [vmem:[#allocation2 + $0x8] sm:$0xff]  ;;  %s156_s14 = sshll.u32 %s317_s13, 4  ;;  %s158_s16 = sshll.u32 %s379_s5, 4  ;;  %s157_s14 = int_to_ptr.vmem [resolvable:$true] %s156_s14  ;;  %s159_s16 = int_to_ptr.hbm [resolvable:$true] %s158_s16 }
  0x11   :  { %v71_v4 = vpack.c.bf16 %v70_v3, %v69_v2  ;;  %v193_v5 = vld [vmem:[#allocation7 + $0x8] sm:$0xff]  ;;  %v192_v6 = vld [vmem:[#allocation7] sm:$0xff] }
  0x12   :  { %142 = vmatpush.bf16.msra.mxu1 %v193_v5  ;;  %v202_v8 = vld [vmem:[%s376_s2] ss:$0 sm:$0xff] }
  0x13   :  { %v203_v15 = vld [vmem:[%s378_s4] ss:$0 sm:$0xff] }
  0x14   :  { %103 = vmatpush.bf16.msra.mxu0 %v190_v1 }
  0x16   :  { %143 = vmatpush.bf16.msra.mxu1 %v192_v6 }
  0x17   :  { %180 = vmatmul.msk.bf16.vlgmr.msra.gmra.mxu0 %vm92_vm0, %v71_v4 }
  0x94   :  { %v105_v7 = vpop.f32.mrf.mxu0 }
  0x95   :  { %v106_v9 = vadd.f32 %v202_v8, %v105_v7 }
  0x97   :  { %204 = vtanh.f32 %v106_v9 }
  0x9c   :  { %v107_v10 = vpop.f32.mrf.mxu0 }
  0x9d   :  { %v108_v11 = vadd.f32 %v202_v8, %v107_v10  ;;  %v205_v12 = vpop.eup %204 }
  0x9f   :  { %206 = vtanh.f32 %v108_v11 }
  0xa5   :  { %v207_v13 = vpop.eup %206 }
  0xa6   :  { %v112_v14 = vpack.c.bf16 %v207_v13, %v205_v12 }
  0xa8   :  { %189 = vmatmul.msk.bf16.vlgmr.msra.gmra.mxu1 %vm92_vm0, %v112_v14 }
 0x125   :  { %v145_v16 = vpop.f32.mrf.mxu1 }
 0x126   :  { %v146_v17 = vadd.f32 %v203_v15, %v145_v16 }
 0x128   :  { %150 = vst [vmem:[#allocation8] sm:$0xff] %v146_v17 }
 0x12d   :  { %v147_v18 = vpop.f32.mrf.mxu1 }
 0x12e   :  { %v148_v19 = vadd.f32 %v203_v15, %v147_v18 }
 0x130   :  { %151 = vst [vmem:[#allocation8 + $0x8] sm:$0xff] %v148_v19 }
 0x131   :  { %164 = dma.vmem_to_hbm [thread:$0]  %s157_s14, 256, %s159_s16, [#allocation4], %s314_s30, %s314_s30, %s315_s6  }
 0x132   :  { %308 = dma.done.wait [#allocation4], 256  }
 0x133   :  { %309 = vsyncadd [#allocation4], 4294967040 }
 0x134   :  { %169 = vsyncpa [#allocation3], 1 }
 0x135   :  { %170 = vsyncpa [#allocation6], 1 }
 0x136   :  { %171 = vsyncpa [#allocation4], 1 }

</bundles_post_ra>
